<compile_context>
chip_gen: v7x
topology: tpu7x:2x2x1
jax: 0.10.0
libtpu: 0.0.40
codegen_flags: <defaults>
</compile_context>

<pallas_src>
import functools

import jax
import jax.numpy as jnp
import numpy as np
from jax import lax
from jax.experimental import pallas as pl
from jax.experimental.pallas import tpu as pltpu


# ---------------------------------------------------------------------------
# Helpers
# ---------------------------------------------------------------------------
def _pick_batch_block(b, batch_block=None):
    """Batch elements per grid step: large enough to amortize the ~0.35us/step
    overhead, small enough that the grid keeps >= 4 steps (software pipelining
    plus >= 2 steps per TensorCore on 2-TC chips)."""
    if batch_block is None:
        batch_block = max(1, min(8, b // 4)) if b >= 4 else 1
    batch_block = max(1, min(batch_block, b))
    while b % batch_block:
        batch_block -= 1
    return batch_block


def _mxu_is_256():
    """True on chips with a 256x256 MXU (v6e / v7x); False on 128x128 (<= v5)."""
    try:
        kind = jax.devices()[0].device_kind.lower()
    except Exception:
        return True
    return not any(tag in kind for tag in ("v2", "v3", "v4", "v5"))


def _vmem_limit(need_bytes, headroom=8 << 20, cap=64 << 20):
    return int(min(max(need_bytes + headroom, 16 << 20), cap))


def _block_diag(w, bb):
    """(r, c) -> (bb*r, bb*c) with bb copies of w on the block diagonal."""
    r, c = w.shape
    eye = jnp.eye(bb, dtype=w.dtype)
    return (eye[:, None, :, None] * w[None, :, None, :]).reshape(bb * r, bb * c)


# ---------------------------------------------------------------------------
# Generic PreNorm path: InstanceNorm2d(affine=True) as a standalone kernel.
# ---------------------------------------------------------------------------
def _instance_norm_kernel(x_ref, gamma_ref, beta_ref, o_ref, *, eps):
    x = x_ref[...].astype(jnp.float32)                    # (bb, c, n)
    n = x.shape[-1]
    s1 = jnp.sum(x, axis=-1, keepdims=True)               # independent lane reductions
    s2 = jnp.sum(x * x, axis=-1, keepdims=True)
    mu = s1 * (1.0 / n)
    var = s2 * (1.0 / n) - mu * mu                        # biased, like InstanceNorm2d
    scale = lax.rsqrt(var + eps) * gamma_ref[...][None]   # (bb, c, 1)
    shift = beta_ref[...][None] - mu * scale
    o_ref[...] = (x * scale + shift).astype(o_ref.dtype)


def instance_norm2d(x, gamma, beta, *, eps=1e-5, batch_block=None):
    """InstanceNorm2d(dim, affine=True) on NCHW input as a Pallas kernel."""
    b, c, h, w = x.shape
    n = h * w
    bb = _pick_batch_block(b, batch_block)
    x_flat = x.reshape(b, c, n)
    kernel = functools.partial(_instance_norm_kernel, eps=eps)
    need = 2 * 2 * bb * c * n * 4                         # double-buffered in/out blocks
    y = pl.pallas_call(
        kernel,
        out_shape=jax.ShapeDtypeStruct((b, c, n), x.dtype),
        grid_spec=pltpu.PrefetchScalarGridSpec(
            num_scalar_prefetch=0,
            grid=(b // bb,),
            in_specs=[
                pl.BlockSpec((bb, c, n), lambda i: (i, 0, 0)),   # x
                pl.BlockSpec((c, 1), lambda i: (0, 0)),          # gamma
                pl.BlockSpec((c, 1), lambda i: (0, 0)),          # beta
            ],
            out_specs=pl.BlockSpec((bb, c, n), lambda i: (i, 0, 0)),
        ),
        compiler_params=pltpu.CompilerParams(
            dimension_semantics=("parallel",),
            vmem_limit_bytes=_vmem_limit(need)),
    )(x_flat, gamma.reshape(c, 1), beta.reshape(c, 1))
    return y.reshape(b, c, h, w)


def pre_norm(x, gamma, beta, fn, *, eps=1e-5):
    """PreNorm.forward: fn(InstanceNorm2d(x)).  `fn` is any JAX callable."""
    return fn(instance_norm2d(x, gamma, beta, eps=eps))


# ---------------------------------------------------------------------------
# Fused fast path: PreNorm(dim, LinearAttention/GlobalMixing) in one kernel.
# ---------------------------------------------------------------------------
def _pre_norm_attention_kernel(x_ref, gamma_ref, beta_ref, wqkv_ref, wout_ref,
                               bout_ref, o_ref, qkv_scr, attn_scr,
                               *, heads, dim_head, eps, group):
    bb, c, n = x_ref.shape
    hidden = heads * dim_head
    bbh = bb * hidden
    gh = group * hidden

    # ---- InstanceNorm2d over the whole (bb, c, n) block, one-pass stats ----
    x = x_ref[...].astype(jnp.float32)
    s1 = jnp.sum(x, axis=-1, keepdims=True)
    s2 = jnp.sum(x * x, axis=-1, keepdims=True)
    mu = s1 * (1.0 / n)
    var = s2 * (1.0 / n) - mu * mu
    scale = lax.rsqrt(var + eps) * gamma_ref[...][None]    # (bb, c, 1)
    shift = beta_ref[...][None] - mu * scale
    xn = (x * scale + shift).reshape(bb * c, n).astype(jnp.bfloat16)

    # ---- q/k/v 1x1 conv: ONE matmul per grid step.  Batch is folded in via a
    #      block-diagonal weight so the result lands batch-major on ROWS:
    #      rows [0,bbh)=q, [bbh,2bbh)=k, [2bbh,3bbh)=v, each batch-contiguous,
    #      so per-(pair of) batch slices below are free row slices. ------------
    qkv_scr[...] = lax.dot_general(
        wqkv_ref[...], xn, (((0,), (0,)), ((), ())),
        preferred_element_type=jnp.float32).astype(jnp.bfloat16)

    # ---- per-(pair of) batch attention: softmax + two MXU matmuls -----------
    # group == 2 stacks a batch pair into 256-row operands (fills the v6e/v7x
    # 256x256 MXU); the dim_head-granular block-diagonal mask keeps heads AND
    # batch elements from mixing.  group == 1 keeps 128-wide matmuls (v5e).
    hrow = lax.broadcasted_iota(jnp.int32, (gh, gh), 0) // dim_head
    hcol = lax.broadcasted_iota(jnp.int32, (gh, gh), 1) // dim_head
    head_mask = hrow == hcol

    def pair_body(p, carry):
        r = pl.multiple_of(p * gh, gh)
        # softmax over n on this slice's k rows: bf16 staging, f32 math.
        k = qkv_scr[pl.ds(bbh + r, gh), :].astype(jnp.float32)
        k = k - jnp.max(k, axis=-1, keepdims=True)
        ek = jnp.exp(k)
        kb = (ek * pl.reciprocal(jnp.sum(ek, axis=-1, keepdims=True), approx=True)
              ).astype(jnp.bfloat16)
        vb = qkv_scr[pl.ds(2 * bbh + r, gh), :]
        qb = qkv_scr[pl.ds(r, gh), :]
        ctx = lax.dot_general(kb, vb, (((1,), (1,)), ((), ())),
                              preferred_element_type=jnp.float32)      # (gh, gh)
        ctx = jnp.where(head_mask, ctx, 0.0).astype(jnp.bfloat16)
        out = lax.dot_general(ctx, qb, (((0,), (0,)), ((), ())),
                              preferred_element_type=jnp.float32)      # (gh, n)
        attn_scr[pl.ds(r, gh), :] = out.astype(jnp.bfloat16)
        return carry

    lax.fori_loop(0, bb // group, pair_body, 0)

    # ---- output 1x1 conv: ONE matmul (block-diagonal weight) + bias ---------
    y = lax.dot_general(wout_ref[...], attn_scr[...], (((1,), (0,)), ((), ())),
                        preferred_element_type=jnp.float32)            # (bb*c, n)
    o_ref[...] = (y.reshape(bb, c, n) + bout_ref[...][None]).astype(o_ref.dtype)


def pre_norm_global_mixing(x, gamma, beta, w_qkv, w_out, b_out, *,
                           heads, dim_head, eps=1e-5, batch_block=None,
                           pair_batches=None):
    """Fused PreNorm(dim, LinearAttention/GlobalMixing): norm + attention in one kernel.

    x: (b, c, h, w) NCHW; gamma/beta: (c,) InstanceNorm affine params;
    w_qkv: (3*heads*dim_head, c); w_out: (c, heads*dim_head); b_out: (c,).
    """
    b, c, h, w = x.shape
    n = h * w
    hidden = heads * dim_head
    assert w_qkv.shape == (3 * hidden, c)
    assert w_out.shape == (c, hidden)
    bb = _pick_batch_block(b, batch_block)
    if pair_batches is None:
        pair_batches = _mxu_is_256()
    group = 2 if (pair_batches and bb % 2 == 0) else 1

    # Batch-block-diagonal weights, built once in the wrapper (bf16, lane-dense,
    # contracting dim first).  They make the K=c projection and M=c out-projection
    # each a single matmul per grid step with the result batch-major on rows.
    wq, wk, wv = w_qkv[:hidden], w_qkv[hidden:2 * hidden], w_qkv[2 * hidden:]
    wqkv_bd = jnp.concatenate(
        [_block_diag(wq, bb), _block_diag(wk, bb), _block_diag(wv, bb)], axis=0)
    wqkv_bdt = wqkv_bd.T.astype(jnp.bfloat16)               # (bb*c, 3*bb*hidden)
    wout_bd = _block_diag(w_out, bb).astype(jnp.bfloat16)   # (bb*c, bb*hidden)

    x_flat = x.reshape(b, c, n)
    kernel = functools.partial(_pre_norm_attention_kernel, heads=heads,
                               dim_head=dim_head, eps=eps, group=group)

    need = (2 * 2 * bb * c * n * 4                      # double-buffered x / out blocks
            + 2 * 2 * (bb * c) * (4 * bb * hidden)      # bf16 weights (x2 buffers)
            + 4 * bb * hidden * n * 2                   # bf16 q/k/v + attention scratch
            + 8 * group * hidden * n)                   # in-flight f32 softmax temporaries
    # TODO(synk): for large spatial extents (n >= ~8K, e.g. 128x128 frames) tile n inside
    # the kernel with a two-pass softmax so scratch stays inside v7x's 64 MiB VMEM; the
    # current single-slab layout is sized for diffuser's small feature maps.

    y = pl.pallas_call(
        kernel,
        out_shape=jax.ShapeDtypeStruct((b, c, n), x.dtype),
        grid_spec=pltpu.PrefetchScalarGridSpec(
            num_scalar_prefetch=0,
            grid=(b // bb,),
            in_specs=[
                pl.BlockSpec((bb, c, n), lambda i: (i, 0, 0)),               # x
                pl.BlockSpec((c, 1), lambda i: (0, 0)),                      # gamma
                pl.BlockSpec((c, 1), lambda i: (0, 0)),                      # beta
                pl.BlockSpec((bb * c, 3 * bb * hidden), lambda i: (0, 0)),   # W_qkv (block-diag, T)
                pl.BlockSpec((bb * c, bb * hidden), lambda i: (0, 0)),       # W_out (block-diag)
                pl.BlockSpec((c, 1), lambda i: (0, 0)),                      # b_out
            ],
            out_specs=pl.BlockSpec((bb, c, n), lambda i: (i, 0, 0)),
            scratch_shapes=[
                pltpu.VMEM((3 * bb * hidden, n), jnp.bfloat16),   # q / k / v (batch-major rows)
                pltpu.VMEM((bb * hidden, n), jnp.bfloat16),       # per-batch attention output
            ],
        ),
        compiler_params=pltpu.CompilerParams(
            dimension_semantics=("parallel",),
            vmem_limit_bytes=_vmem_limit(need)),
    )(x_flat, gamma.reshape(c, 1), beta.reshape(c, 1), wqkv_bdt, wout_bd,
      b_out.reshape(c, 1))
    return y.reshape(b, c, h, w)


# ---------------------------------------------------------------------------
# Pure-JAX references (mirror the PyTorch forward exactly, all f32).
# ---------------------------------------------------------------------------
def instance_norm2d_ref(x, gamma, beta, eps=1e-5):
    mu = jnp.mean(x, axis=(2, 3), keepdims=True)
    var = jnp.mean((x - mu) ** 2, axis=(2, 3), keepdims=True)
    return ((x - mu) / jnp.sqrt(var + eps)
            * gamma[None, :, None, None] + beta[None, :, None, None])


def global_mixing_ref(x, w_qkv, w_out, b_out, *, heads, dim_head):
    b, c, h, w = x.shape
    n = h * w
    hidden = heads * dim_head
    xf = x.reshape(b, c, n)
    qkv = jnp.einsum('oc,bcn->bon', w_qkv, xf)                 # 1x1 conv, no bias
    qkv = qkv.reshape(b, 3, heads, dim_head, n)
    q, k, v = qkv[:, 0], qkv[:, 1], qkv[:, 2]
    k = jax.nn.softmax(k, axis=-1)
    context = jnp.einsum('bhdn,bhen->bhde', k, v)
    out = jnp.einsum('bhde,bhdn->bhen', context, q)
    out = out.reshape(b, hidden, n)
    y = jnp.einsum('oc,bcn->bon', w_out, out) + b_out.reshape(1, c, 1)
    return y.reshape(b, c, h, w)


def pre_norm_ref(x, gamma, beta, fn, eps=1e-5):
    return fn(instance_norm2d_ref(x, gamma, beta, eps=eps))


if __name__ == "__main__":
    # Shapes consistent with temporal.py: PreNorm(dim=8, GlobalMixing(8, heads=4, dim_head=32)).
    # B=8 gives bb=2 -> a 4-step grid (pipelined, 2 steps per TC on 2-TC chips) and
    # exercises the 256-wide batch-pair attention path on v6e/v7x.
    B, DIM, H, W = 8, 8, 16, 16
    HEADS, DIM_HEAD = 4, 32
    HIDDEN = HEADS * DIM_HEAD

    key = jax.random.PRNGKey(0)
    kx, kg, kbeta, kq, ko, kbo = jax.random.split(key, 6)

    x = jax.random.normal(kx, (B, DIM, H, W), dtype=jnp.float32)
    # InstanceNorm2d affine params (perturbed around the PyTorch init of 1 / 0).
    gamma = 1.0 + 0.1 * jax.random.normal(kg, (DIM,), dtype=jnp.float32)
    beta = 0.1 * jax.random.normal(kbeta, (DIM,), dtype=jnp.float32)
    # Weights of the fn that PreNorm wraps (1x1-conv linear attention).
    w_qkv = 0.05 * jax.random.normal(kq, (3 * HIDDEN, DIM), dtype=jnp.float32)
    w_out = 0.05 * jax.random.normal(ko, (DIM, HIDDEN), dtype=jnp.float32)
    b_out = 0.05 * jax.random.normal(kbo, (DIM,), dtype=jnp.float32)

    # 1) Generic PreNorm path: Pallas InstanceNorm2d kernel + arbitrary JAX fn.
    identity_fn = lambda t: t
    y_norm = jax.block_until_ready(pre_norm(x, gamma, beta, identity_fn))
    y_norm_ref = pre_norm_ref(x, gamma, beta, identity_fn)
    np.testing.assert_allclose(np.asarray(y_norm), np.asarray(y_norm_ref),
                               rtol=1e-3, atol=1e-3)

    # 2) Fused PreNorm(dim, LinearAttention) fast path (norm + attention in one kernel).
    y = pre_norm_global_mixing(x, gamma, beta, w_qkv, w_out, b_out,
                               heads=HEADS, dim_head=DIM_HEAD)
    y = jax.block_until_ready(y)
    attn_fn = functools.partial(global_mixing_ref, w_qkv=w_qkv, w_out=w_out,
                                b_out=b_out, heads=HEADS, dim_head=DIM_HEAD)
    y_ref = pre_norm_ref(x, gamma, beta, attn_fn)
    # bf16 matmul operands / staging (f32 accumulation) => looser tolerance than pure f32.
    np.testing.assert_allclose(np.asarray(y), np.asarray(y_ref), rtol=3e-2, atol=3e-3)

    print("KERNEL_OK")
</pallas_src>

<mosaic_0001>
module attributes {stable_mosaic.version = 11 : i64} {
  func.func @_instance_norm_kernel(%arg0: i32, %arg1: memref<2x8x256xf32, #tpu.memory_space<vmem>>, %arg2: memref<8x1xf32, #tpu.memory_space<vmem>>, %arg3: memref<8x1xf32, #tpu.memory_space<vmem>>, %arg4: memref<2x8x256xf32, #tpu.memory_space<vmem>>) attributes {dimension_semantics = [#tpu.dimension_semantics<parallel>], iteration_bounds = array<i64: 4>, scalar_prefetch = 0 : i64, scratch_operands = 0 : i64, tpu.core_type = #tpu.core_type<tc>, window_params = [{transform_indices = @transform_0, window_bounds = array<i64: 2, 8, 256>}, {pipeline_mode = #tpu.pipeline_mode<synchronous>, transform_indices = @transform_1, window_bounds = array<i64: 8, 1>}, {pipeline_mode = #tpu.pipeline_mode<synchronous>, transform_indices = @transform_2, window_bounds = array<i64: 8, 1>}, {transform_indices = @transform_3, window_bounds = array<i64: 2, 8, 256>}]} {
    %c0 = arith.constant 0 : index
    %c0_0 = arith.constant 0 : index
    %c0_1 = arith.constant 0 : index
    %0 = vector.load %arg1[%c0, %c0_0, %c0_1] : memref<2x8x256xf32, #tpu.memory_space<vmem>>, vector<2x8x256xf32>
    %cst = arith.constant dense<0.000000e+00> : vector<2x8xf32>
    %1 = vector.multi_reduction <add>, %0, %cst [2] : vector<2x8x256xf32> to vector<2x8xf32>
    %2 = vector.shape_cast %1 : vector<2x8xf32> to vector<2x8x1xf32>
    %3 = arith.mulf %0, %0 : vector<2x8x256xf32>
    %cst_2 = arith.constant dense<0.000000e+00> : vector<2x8xf32>
    %4 = vector.multi_reduction <add>, %3, %cst_2 [2] : vector<2x8x256xf32> to vector<2x8xf32>
    %5 = vector.shape_cast %4 : vector<2x8xf32> to vector<2x8x1xf32>
    %cst_3 = arith.constant 3.906250e-03 : f32
    %6 = vector.broadcast %cst_3 : f32 to vector<2x8x1xf32>
    %7 = arith.mulf %2, %6 : vector<2x8x1xf32>
    %cst_4 = arith.constant 3.906250e-03 : f32
    %8 = vector.broadcast %cst_4 : f32 to vector<2x8x1xf32>
    %9 = arith.mulf %5, %8 : vector<2x8x1xf32>
    %10 = arith.mulf %7, %7 : vector<2x8x1xf32>
    %11 = arith.subf %9, %10 : vector<2x8x1xf32>
    %cst_5 = arith.constant 9.99999974E-6 : f32
    %12 = vector.broadcast %cst_5 : f32 to vector<2x8x1xf32>
    %13 = arith.addf %11, %12 : vector<2x8x1xf32>
    %14 = math.rsqrt %13 : vector<2x8x1xf32>
    %c0_6 = arith.constant 0 : index
    %c0_7 = arith.constant 0 : index
    %15 = vector.load %arg2[%c0_6, %c0_7] : memref<8x1xf32, #tpu.memory_space<vmem>>, vector<8x1xf32>
    %16 = vector.shape_cast %15 : vector<8x1xf32> to vector<1x8x1xf32>
    %17 = vector.broadcast %16 : vector<1x8x1xf32> to vector<2x8x1xf32>
    %18 = arith.mulf %14, %17 : vector<2x8x1xf32>
    %c0_8 = arith.constant 0 : index
    %c0_9 = arith.constant 0 : index
    %19 = vector.load %arg3[%c0_8, %c0_9] : memref<8x1xf32, #tpu.memory_space<vmem>>, vector<8x1xf32>
    %20 = vector.shape_cast %19 : vector<8x1xf32> to vector<1x8x1xf32>
    %21 = arith.mulf %7, %18 : vector<2x8x1xf32>
    %22 = vector.broadcast %20 : vector<1x8x1xf32> to vector<2x8x1xf32>
    %23 = arith.subf %22, %21 : vector<2x8x1xf32>
    %24 = vector.broadcast %18 : vector<2x8x1xf32> to vector<2x8x256xf32>
    %25 = arith.mulf %0, %24 : vector<2x8x256xf32>
    %26 = vector.broadcast %23 : vector<2x8x1xf32> to vector<2x8x256xf32>
    %27 = arith.addf %25, %26 : vector<2x8x256xf32>
    %c0_10 = arith.constant 0 : index
    %c0_11 = arith.constant 0 : index
    %c0_12 = arith.constant 0 : index
    %28 = vector.load %arg4[%c0_10, %c0_11, %c0_12] : memref<2x8x256xf32, #tpu.memory_space<vmem>>, vector<2x8x256xf32>
    tpu.vector_store %arg4[%c0_10, %c0_11, %c0_12], %27 {strides = array<i32>} : memref<2x8x256xf32, #tpu.memory_space<vmem>>, vector<2x8x256xf32>,
    return
  }
  func.func @transform_0(%arg0: i32) -> (i32, i32, i32) {
    %c0_i32 = arith.constant 0 : i32
    %c0_i32_0 = arith.constant 0 : i32
    %c0_i32_1 = arith.constant 0 : i32
    return %arg0, %c0_i32, %c0_i32_0 : i32, i32, i32
  }
  func.func @transform_1(%arg0: i32) -> (i32, i32) {
    %c0_i32 = arith.constant 0 : i32
    %c0_i32_0 = arith.constant 0 : i32
    %c0_i32_1 = arith.constant 0 : i32
    return %c0_i32, %c0_i32_0 : i32, i32
  }
  func.func @transform_2(%arg0: i32) -> (i32, i32) {
    %c0_i32 = arith.constant 0 : i32
    %c0_i32_0 = arith.constant 0 : i32
    %c0_i32_1 = arith.constant 0 : i32
    return %c0_i32, %c0_i32_0 : i32, i32
  }
  func.func @transform_3(%arg0: i32) -> (i32, i32, i32) {
    %c0_i32 = arith.constant 0 : i32
    %c0_i32_0 = arith.constant 0 : i32
    %c0_i32_1 = arith.constant 0 : i32
    return %arg0, %c0_i32, %c0_i32_0 : i32, i32, i32
  }
}

</mosaic_0001>

<bundles_post_ra>
// kernel: tpu_custom_call.1
= control target key start
LH: loop header
LB: loop body
LE: loop exit
PB: predicated region body
PF: predicated region fallthrough
CT: control target
= control target key end

     0   :  { %8 = vsyncpa [#allocation3], 0  ;;  %s724_s0 = inlined_call_operand.hbm [shape: f32[8,8,256], index: 0, kind: input, shape index: {}]   ;;  %s725_s1 = inlined_call_operand.vmem [shape: f32[8,1], index: 1, kind: input, shape index: {}]   ;;  %s726_s2 = inlined_call_operand.vmem [shape: f32[8,1], index: 2, kind: input, shape index: {}]   ;;  %s727_s3 = inlined_call_operand.hbm [shape: f32[8,8,256], index: 3, kind: output, shape index: {}]  }
   0x1   :  { %10 = vsyncpa [#allocation3 + $0x1], 0 }
   0x2   :  { %11 = vsyncpa [#allocation4], 0 }
   0x3   :  { %13 = vsyncpa [#allocation4 + $0x1], 0  ;;  %s554_s12 = smov 0   ;;  %s556_s13 = smov 0  }
   0x4   :  { %s558_s14 = smov 0   ;;  %s560_s15 = smov 0  }
   0x5 LB: > { %s575_s16 = sadd.s32 4294967295, %s525_s15   ;;  %s352_s17 = sadd.s32 4294967294, %s525_s15   ;;  %s525_s15 = sphi %s560_s15, %s739_s15   ;;  %s521_s14 = sphi %s558_s14, %s738_s14   ;;  %s517_s13 = sphi %s556_s13, %s737_s13   ;;  %s513_s12 = sphi %s554_s12, %s736_s12  }
   0x6   : > { %s579_s18 = sadd.s32 1, %s525_s15   ;;  %s26_s19 = sadd.s32 1, %s521_s14 }
   0x7   : > { %s23_s20 = ssub.s32 %s525_s15, %s579_s18  ;;  %p33_p0 = scmp.ne.s32.totalorder %s521_s14, %s517_s13 }
   0x8   : > { %p24_p1 = scmp.eq.s32.totalorder %s23_s20, 0  ;;  %p34_p2 = scmp.eq.s32.totalorder %s525_s15, 0 }
   0x9   : > { %p39_p3 = scmp.ne.s32.totalorder %s517_s13, %s513_s12  ;;  %p40_p4 = scmp.eq.s32.totalorder %s575_s16, 0 }
   0xa   : > { %s591_s21 = scalar_select %p24_p1, %s521_s14, %s26_s19  }
   0xb   : > { %p593_p5 = por %p34_p2, %p33_p0  ;;  %p597_p6 = por %p40_p4, %p39_p3 }
   0xc   : > { %p105_p7 = scmp.eq.s32.totalorder %s575_s16, 3  ;;  %p111_p8 = scmp.eq.s32.totalorder %s352_s17, 3 }
   0xd   : > { %p384_p9 = scmp.lt.s32.totalorder %s525_s15, 4  ;;  %s137_s26 = sand.u32 1, %s521_s14  }
   0xe   : > { %p603_p10 = por %p105_p7, %p33_p0  ;;  %p607_p11 = por %p111_p8, %p39_p3 }
   0xf   : > { %s369_s27 = sshll.u32 %s525_s15, 9  ;;  %s355_s28 = sshll.u32 %s137_s26, 5 }
  0x10   : > { %s731_s24 = scalar_select %p603_p10, 1, 0 }
  0x11   : > { %s732_s25 = scalar_select %p607_p11, 1, 0 }
  0x12   : > { %s616_s4 = scalar_lea.hbm %s724_s0, %s369_s27  ;;  %s141_s5 = scalar_lea.vmem [#allocation2], %s355_s28 }
  0x13   : > { %s149_s6 = sshll.u32 %s141_s5, 4  ;;  %p620_p12 = pnand %p384_p9, %p593_p5  ;;  %s624_s6 = int_to_ptr.vmem [resolvable:$true] %s149_s6 }
  0x14   : > { %s626_s8 = scalar_lea.sflag [#allocation3], %s137_s26  ;;  %s429_s9 = scalar_lea.hbm %s616_s4, 512 }
  0x15   : > { %p430_p13 = scmp.ne.s32.totalorder %s616_s4, %s429_s9  ;;  %p431_p0 = pneg %p620_p12 }
  0x16   : > { %s434_s17 = scalar_lea.hbm %s724_s0, 2048  ;;  %p435_p3 = scmp.lt.u32.totalorder %s616_s4, %s724_s0 }
  0x17   : > { %p432_p1 = pnand %p431_p0, %p430_p13  ;;  %p436_p4 = scmp.lt.u32.totalorder %s434_s17, %s429_s9 }
  0x18   : > { %p438_p7 = scmp.lt.u32.totalorder %s429_s9, %s616_s4 }
  0x19   : > { %p433_p2 = pneg %p432_p1  ;;  %p437_p5 = por %p436_p4, %p435_p3 }
  0x1b   : > { %p439_p8 = por %p438_p7, %p437_p5 }
  0x1d   : > { %p440_p9 = pnand %p439_p8, %p433_p2 }
  0x1f   : > { %443 = shalt.err (!%p440_p9)
}
  0x20   : > { %s444_s22 = scalar_lea.vmem %s624_s6, 512  ;;  %s527_s26 = smov [#allocation2]  }
  0x21   : > { %p445_p13 = scmp.ne.s32.totalorder %s624_s6, %s444_s22  ;;  %s449_s27 = sshll.u32 %s527_s26, 4  ;;  %s450_s27 = int_to_ptr.vmem [resolvable:$false] %s449_s27 }
  0x22   : > { %s451_s28 = scalar_lea.vmem %s450_s27, 1024  ;;  %p452_p10 = scmp.lt.s32.totalorder %s624_s6, %s450_s27 }
  0x23   : > { %p447_p1 = pnand %p445_p13, %p431_p0  ;;  %p453_p3 = scmp.lt.s32.totalorder %s451_s28, %s444_s22 }
  0x25   : > { %p448_p11 = pneg %p447_p1  ;;  %p454_p4 = por %p453_p3, %p452_p10 }
  0x27   : > { %p455_p5 = pnand %p454_p4, %p448_p11 }
  0x29   : > { %458 = shalt.err (!%p455_p5)
}
  0x2a   : > { %s528_s29 = smov 256   ;;  %s529_s30 = smov 16  }
  0x2b   : > { %379 = dma.hbm_to_vmem [thread:$0]  (!%p620_p12), %s616_s4, 512, %s624_s6, %s626_s8, %s528_s29, %s528_s29, %s529_s30  }
  0x2c   : > { %p359_p0 = scmp.ge.s32.totalorder %s525_s15, 1  ;;  %p157_p2 = scmp.lt.s32.totalorder %s525_s15, 5 }
  0x2e   : > { %p158_p7 = pnand %p359_p0, %p157_p2 }
  0x2f   : > { %s657_s5 = sand.u32 (!%p158_p7), 1, %s517_s13  }
  0x30   : > { %161 = sbr.rel (%p158_p7) target bundleno = 379 (0x17b), region = 32  ;;  %s360_s9 = sshll.u32 (!%p158_p7), %s657_s5, 5 }
  0x31   : > { %s164_s10 = scalar_lea.sflag (!%p158_p7), [#allocation3], %s657_s5  ;;  %s167_s11 = scalar_lea.vmem (!%p158_p7), [#allocation2], %s360_s9 }
  0x37   : > { %504 = dma.done.wait (%p597_p6), %s164_s10, 512  }
  0x38   : > { %506 = vsyncadd (%p597_p6), %s164_s10, 4294966784  ;;  %v192_v0 = vld [vmem:[%s167_s11] sm:$0xff]  ;;  %v193_v1 = vld [vmem:[%s167_s11 + $0x8] sm:$0xff]  ;;  %v530_v12 = vmov 0   ;;  %s189_s8 = scalar_lea.vmem [#allocation5], %s360_s9  ;;  %s371_s19 = sshll.u32 %s575_s16, 9 }
  0x39   : > { %v194_v2 = vld [vmem:[%s167_s11 + $0x10] sm:$0xff]  ;;  %v196_v3 = vadd.f32 %v193_v1, %v192_v0  ;;  %v202_v4 = vmul.f32 %v192_v0, %v192_v0  ;;  %v203_v5 = vmul.f32 %v193_v1, %v193_v1  ;;  %v195_v6 = vld [vmem:[%s167_s11 + $0x18] sm:$0xff]  ;;  %423 = vset.pattern.permute.xlu0 %v530_v12  ;;  %424 = vset.pattern.permute.xlu1 %v530_v12  ;;  %v224_v27 = vld [vmem:[%s725_s1] sm:$0xff]  ;;  %s279_s17 = sshll.u32 %s189_s8, 4  ;;  %s681_s26 = scalar_lea.hbm %s727_s3, %s371_s19  ;;  %s676_s17 = int_to_ptr.vmem [resolvable:$true] %s279_s17 }
  0x3a   : > { %v204_v7 = vmul.f32 %v194_v2, %v194_v2  ;;  %v205_v8 = vmul.f32 %v195_v6, %v195_v6  ;;  %v199_v10 = vadd.f32 %v195_v6, %v194_v2  ;;  %v227_v33 = vld [vmem:[%s726_s2] sm:$0xff]  ;;  %s265_s16 = scalar_lea.sflag [#allocation4], %s657_s5  ;;  %s459_s27 = scalar_lea.vmem %s676_s17, 512 }
  0x3b   : > { %197 = vadd.xlane.f32.xlu0 %v196_v3  ;;  %v206_v9 = vadd.f32 %v203_v5, %v202_v4  ;;  %p460_p6 = scmp.ne.s32.totalorder %s676_s17, %s459_s27  ;;  %p734_p10 = scmp.ne.s32.totalorder %s731_s24, 0 }
  0x3c   : > { %v209_v11 = vadd.f32 %v205_v8, %v204_v7  ;;  %s531_s28 = smov [#allocation5]  }
  0x3d   : > { %207 = vadd.xlane.f32.xlu1 %v206_v9  ;;  %p461_p11 = pnand %p460_p6, %p734_p10  ;;  %s463_s29 = sshll.u32 %s531_s28, 4  ;;  %s464_s29 = int_to_ptr.vmem [resolvable:$false] %s463_s29 }
  0x3e   : > { %s465_s30 = scalar_lea.vmem %s464_s29, 1024  ;;  %p466_p8 = scmp.lt.s32.totalorder %s676_s17, %s464_s29 }
  0x3f   : > { %200 = vadd.xlane.f32.xlu0 %v199_v10  ;;  %p462_p12 = pneg %p461_p11  ;;  %p467_p9 = scmp.lt.s32.totalorder %s465_s30, %s459_s27 }
  0x41   : > { %210 = vadd.xlane.f32.xlu1 %v209_v11  ;;  %p468_p13 = por %p467_p9, %p466_p8 }
  0x43   : > { %p469_p1 = pnand %p468_p13, %p462_p12 }
  0xc8   : > { %v198_v13 = vpop.xlane.xlu0 %197 }
  0xc9   : > { %v212_v14 = vmul.f32 0.00390625, %v198_v13 }
  0xca   : > { %v208_v15 = vpop.xlane.xlu1 %207 }
  0xcb   : > { %v216_v16 = vmul.f32 %v212_v14, %v212_v14  ;;  %v214_v17 = vmul.f32 0.00390625, %v208_v15 }
  0xcc   : > { %v201_v18 = vpop.xlane.xlu0 %200 }
  0xcd   : > { %v218_v19 = vsub.f32 %v214_v17, %v216_v16  ;;  %v213_v20 = vmul.f32 0.00390625, %v201_v18 }
  0xce   : > { %v211_v21 = vpop.xlane.xlu1 %210 }
  0xcf   : > { %v220_v22 = vadd.f32 1e-05, %v218_v19  ;;  %v217_v23 = vmul.f32 %v213_v20, %v213_v20  ;;  %v215_v24 = vmul.f32 0.00390625, %v211_v21 }
  0xd1   : > { %425 = vrsqrt.f32 %v220_v22  ;;  %v219_v25 = vsub.f32 %v215_v24, %v217_v23 }
  0xd3   : > { %v221_v26 = vadd.f32 1e-05, %v219_v25 }
  0xd5   : > { %427 = vrsqrt.f32 %v221_v26 }
  0xdb   : > { %v426_v28 = vpop.eup %425 }
  0xdc   : > { %v225_v29 = vmul.f32 %v426_v28, %v224_v27 }
  0xde   : > { %234 = vperm.xlu0 %423, %v225_v29   ;;  %v228_v32 = vmul.f32 %v225_v29, %v212_v14 }
  0xdf   : > { %v428_v30 = vpop.eup %427 }
  0xe0   : > { %v226_v31 = vmul.f32 %v428_v30, %v224_v27  ;;  %v230_v34 = vsub.f32 %v227_v33, %v228_v32 }
  0xe2   : > { %239 = vperm.xlu1 %424, %v226_v31   ;;  %v229_v35 = vmul.f32 %v226_v31, %v213_v20 }
  0xe4   : > { %v231_v36 = vsub.f32 %v227_v33, %v229_v35 }
  0xe6   : > { %248 = vperm.xlu1 %424, %v230_v34  }
  0xea   : > { %253 = vperm.xlu1 %424, %v231_v36  }
 0x15d   : > { %v235_v37 = vpop.permute.xlu0 %234 }
 0x15e   : > { %v242_v39 = vmul.f32 %v235_v37, %v192_v0  ;;  %v243_v40 = vmul.f32 %v235_v37, %v193_v1 }
 0x161   : > { %v240_v38 = vpop.permute.xlu1 %239 }
 0x162   : > { %v244_v44 = vmul.f32 %v240_v38, %v194_v2  ;;  %v245_v45 = vmul.f32 %v240_v38, %v195_v6 }
 0x165   : > { %v249_v41 = vpop.permute.xlu1 %248 }
 0x166   : > { %v256_v42 = vadd.f32 %v249_v41, %v242_v39  ;;  %v257_v43 = vadd.f32 %v249_v41, %v243_v40 }
 0x168   : > { %260 = vst [vmem:[%s189_s8] sm:$0xff] %v256_v42  ;;  %261 = vst [vmem:[%s189_s8 + $0x8] sm:$0xff] %v257_v43 }
 0x169   : > { %v254_v46 = vpop.permute.xlu1 %253 }
 0x16a   : > { %v258_v47 = vadd.f32 %v254_v46, %v244_v44  ;;  %v259_v48 = vadd.f32 %v254_v46, %v245_v45 }
 0x16c   : > { %262 = vst [vmem:[%s189_s8 + $0x10] sm:$0xff] %v258_v47  ;;  %263 = vst [vmem:[%s189_s8 + $0x18] sm:$0xff] %v259_v48 }
 0x16d   : > { %472 = shalt.err (!%p469_p1)
}
 0x16e   : > { %s473_s9 = scalar_lea.hbm %s681_s26, 512  ;;  %s477_s23 = scalar_lea.hbm %s727_s3, 2048 }
 0x16f   : > { %p474_p3 = scmp.ne.s32.totalorder %s681_s26, %s473_s9  ;;  %p478_p0 = scmp.lt.u32.totalorder %s681_s26, %s727_s3 }
 0x170   : > { %p479_p2 = scmp.lt.u32.totalorder %s477_s23, %s473_s9  ;;  %p481_p6 = scmp.lt.u32.totalorder %s473_s9, %s681_s26 }
 0x171   : > { %p475_p4 = pnand %p474_p3, %p734_p10 }
 0x172   : > { %p480_p7 = por %p479_p2, %p478_p0 }
 0x173   : > { %p476_p5 = pneg %p475_p4 }
 0x174   : > { %p482_p11 = por %p481_p6, %p480_p7 }
 0x176   : > { %p483_p12 = pnand %p482_p11, %p476_p5 }
 0x178   : > { %486 = shalt.err (!%p483_p12)
}
 0x179   : > { %s532_s7 = smov 256   ;;  %s533_s8 = smov 16  }
 0x17a   : > { %374 = dma.vmem_to_hbm [thread:$0]  (%p734_p10), %s676_s17, 512, %s681_s26, %s265_s16, %s532_s7, %s532_s7, %s533_s8  }
 0x17b PF: > { %p385_p8 = scmp.ge.s32.totalorder %s525_s15, 2  ;;  %s294_s19 = sand.u32 1, %s513_s12  }
 0x17c   : > { %p735_p9 = scmp.ne.s32.totalorder %s732_s25, 0  ;;  %s295_s20 = scalar_lea.sflag [#allocation4], %s294_s19 }
 0x17e   : > { %p381_p13 = pnand %p385_p8, %p735_p9 }
 0x180   : > { %508 = dma.done.wait (!%p381_p13), %s295_s20, 512  }
 0x181   : > { %510 = vsyncadd (!%p381_p13), %s295_s20, 4294966784  ;;  %p16_p1 = scmp.ge.s32.totalorder %s579_s18, 6   ;;  %s736_s12 = smov %s517_s13 }
 0x182   : > { %s737_s13 = smov %s521_s14  ;;  %s738_s14 = smov %s591_s21 }
 0x183   : > { %s739_s15 = smov %s579_s18  ;;  %18 = sbr.rel (!%p16_p1) target bundleno = 5 (0x5), region = 77 }
 0x18a   :  { %300 = vsyncpa [#allocation3], 1 }
 0x18b   :  { %302 = vsyncpa [#allocation3 + $0x1], 1 }
 0x18c   :  { %303 = vsyncpa [#allocation4], 1 }
 0x18d   :  { %305 = vsyncpa [#allocation4 + $0x1], 1 }

</bundles_post_ra>
